<compile_context>
chip_gen: v5e
topology: v5e:2x2
jax: 0.10.0
libtpu: 0.0.40
codegen_flags: <defaults>
</compile_context>

<pallas_src>
import functools

import jax
import jax.numpy as jnp
from jax.experimental import pallas as pl
from jax.experimental.pallas import tpu as pltpu


def _vmem_limit_bytes():
    """Per-chip VMEM limit: ~75% of physical VMEM (48 MiB on v7x, 96 MiB on v5e/v6e)."""
    try:
        cap = int(pltpu.get_tpu_info().vmem_capacity_bytes)
    except Exception:
        cap = 64 << 20  # conservative fallback: v7x per-TensorCore VMEM
    return min(int(cap * 0.75), 100 << 20)


def _pick_tile_n(n, c, logit_itemsize, vmem_limit):
    """Pick a row-tile size from *padded* VMEM cost, multiple of 8 rows, >= 2 tiles."""
    c_pad = ((c + 127) // 128) * 128
    # padded logits row + padded (tile_n, 1) i32 targets row (lane dim pads to 128)
    bytes_per_row = c_pad * int(logit_itemsize) + 128 * 4
    # double-buffered footprint ~= 2 * per_pair_budget; keep each logits buffer in the
    # 8-16 MiB sweet spot and the total under ~45% of the VMEM limit.
    per_pair_budget = min(16 << 20, max(1 << 20, int(vmem_limit * 0.22)))
    rows = per_pair_budget // bytes_per_row
    rows = max(8, (rows // 8) * 8)
    if n > 8:
        # guarantee >= 2 grid steps so the "parallel" axis feeds both v7x TensorCores
        half = ((-(-n // 2)) + 7) // 8 * 8
        rows = min(rows, half)
    n_pad = ((n + 7) // 8) * 8
    return min(rows, max(8, n_pad))


def _focal_loss_kernel(logits_ref, tgt_ref, out_ref, *, gamma, n_total, tile_n):
    # logits_ref: (tile_n, C) float VMEM tile
    # tgt_ref:    (tile_n, 1) i32 VMEM tile
    # out_ref:    (8, 128)    f32 per-tile partial-sum slab (only [0,0] is used)
    i = pl.program_id(0)

    x = logits_ref[...]
    if x.dtype != jnp.float32:
        x = x.astype(jnp.float32)                               # bf16 streaming -> f32 math
    t = tgt_ref[...]                                            # (tile_n, 1)

    # Numerically stable log-sum-exp (one full-tile exp, reused by both reductions).
    m = jnp.max(x, axis=-1, keepdims=True)                      # (tile_n, 1)   XLU
    z = x - m                                                   # (tile_n, C)   VPU
    lse = jnp.log(jnp.sum(jnp.exp(z), axis=-1, keepdims=True))  # (tile_n, 1)   EUP+XLU

    # Gather the target logit via one compare + select + lane reduction.
    col = jax.lax.broadcasted_iota(jnp.int32, x.shape, 1)       # (tile_n, C)
    tgt_z = jnp.sum(jnp.where(col == t, z, 0.0), axis=-1, keepdims=True)  # (tile_n, 1)

    ce = jnp.maximum(lse - tgt_z, 0.0)                          # clamp rounding negatives
    pt = jnp.exp(-ce)                                           # narrow (tile_n,1) exp; exact
    one_minus_pt = jnp.maximum(1.0 - pt, 0.0)

    if gamma == 2.0:
        w = one_minus_pt * one_minus_pt
    elif gamma == 1.0:
        w = one_minus_pt
    elif gamma == 0.0:
        w = jnp.ones_like(one_minus_pt)
    else:
        w = one_minus_pt ** gamma

    focal = w * ce                                              # (tile_n, 1)

    # Mask rows past the true N (ragged last tile); select so padded garbage can't leak.
    row = jax.lax.broadcasted_iota(jnp.int32, focal.shape, 0) + i * tile_n
    focal = jnp.where(row < n_total, focal, 0.0)
    tile_sum = jnp.sum(focal).reshape(1, 1)

    # Lane-dense (8,128)-aligned partial-sum slab: zero once + one (1,1) masked store.
    out_ref[...] = jnp.zeros_like(out_ref)
    out_ref[0:1, 0:1] = tile_sum


def focal_loss(inputs, targets, *, alpha=1.0, gamma=2.0, tile_n=None):
    """inputs: (N, C) float logits; targets: (N,) int class indices. Returns scalar f32."""
    inputs = jnp.asarray(inputs)
    if not jnp.issubdtype(inputs.dtype, jnp.floating):
        inputs = inputs.astype(jnp.float32)
    n, c = inputs.shape
    tgt2d = jnp.asarray(targets, jnp.int32).reshape(n, 1)

    vmem_limit = _vmem_limit_bytes()
    if tile_n is None:
        tile_n = _pick_tile_n(n, c, inputs.dtype.itemsize, vmem_limit)
    tile_n = max(8, (int(tile_n) // 8) * 8)
    n_pad = ((n + 7) // 8) * 8
    tile_n = min(tile_n, max(8, n_pad))
    num_tiles = pl.cdiv(n, tile_n)

    kernel = functools.partial(
        _focal_loss_kernel, gamma=float(gamma), n_total=n, tile_n=tile_n
    )

    partial_sums = pl.pallas_call(
        kernel,
        out_shape=jax.ShapeDtypeStruct((num_tiles * 8, 128), jnp.float32),
        grid_spec=pltpu.PrefetchScalarGridSpec(
            num_scalar_prefetch=0,
            grid=(num_tiles,),
            in_specs=[
                pl.BlockSpec((tile_n, c), lambda i: (i, 0)),
                pl.BlockSpec((tile_n, 1), lambda i: (i, 0)),
            ],
            out_specs=pl.BlockSpec((8, 128), lambda i: (i, 0)),
        ),
        compiler_params=pltpu.CompilerParams(
            dimension_semantics=("parallel",),
            vmem_limit_bytes=vmem_limit,
        ),
    )(inputs, tgt2d)

    # Tiny final reduction + fold alpha and 1/N into a single scale, outside the kernel.
    return jnp.sum(partial_sums) * jnp.float32(float(alpha) / n)


def _reference_focal_loss(inputs, targets, alpha=1.0, gamma=2.0):
    # pure-JAX reference for sanity checking
    logp = jax.nn.log_softmax(inputs.astype(jnp.float32), axis=-1)
    ce = -jnp.take_along_axis(logp, targets[:, None].astype(jnp.int32), axis=-1)[:, 0]
    pt = jnp.exp(-ce)
    return jnp.mean(alpha * (1.0 - pt) ** gamma * ce)


if __name__ == "__main__":
    key = jax.random.PRNGKey(0)
    k1, k2 = jax.random.split(key)

    # Small shapes consistent with a GNN classifier head: 40 examples, 8 classes.
    # tile_n=16 forces a 3-step grid with a ragged last tile (exercises pipelining + masking).
    N, C = 40, 8
    logits = jax.random.normal(k1, (N, C), dtype=jnp.float32)
    targets = jax.random.randint(k2, (N,), 0, C, dtype=jnp.int32)

    out = focal_loss(logits, targets, alpha=1.0, gamma=2.0, tile_n=16)
    out = jax.block_until_ready(out)

    ref = _reference_focal_loss(logits, targets, alpha=1.0, gamma=2.0)
    # exact pt = exp(-ce) now (no approx reciprocal) -> tight tolerance
    assert jnp.allclose(out, ref, rtol=1e-4, atol=1e-5), (out, ref)

    # Also exercise the auto tile picker (single pallas_call, >= 2 parallel tiles).
    out2 = jax.block_until_ready(focal_loss(logits, targets))
    assert jnp.allclose(out2, ref, rtol=1e-4, atol=1e-5), (out2, ref)

    print("KERNEL_OK")
</pallas_src>

<mosaic_0001>
module attributes {stable_mosaic.version = 11 : i64} {
  func.func @_focal_loss_kernel(%arg0: i32, %arg1: memref<16x8xf32, #tpu.memory_space<vmem>>, %arg2: memref<16x1xi32, #tpu.memory_space<vmem>>, %arg3: memref<8x128xf32, #tpu.memory_space<vmem>>) attributes {dimension_semantics = [#tpu.dimension_semantics<parallel>], iteration_bounds = array<i64: 3>, scalar_prefetch = 0 : i64, scratch_operands = 0 : i64, tpu.core_type = #tpu.core_type<tc>, window_params = [{transform_indices = @transform_0, window_bounds = array<i64: 16, 8>}, {transform_indices = @transform_1, window_bounds = array<i64: 16, 1>}, {transform_indices = @transform_2, window_bounds = array<i64: 8, 128>}]} {
    %c0 = arith.constant 0 : index
    %c0_0 = arith.constant 0 : index
    %0 = vector.load %arg1[%c0, %c0_0] : memref<16x8xf32, #tpu.memory_space<vmem>>, vector<16x8xf32>
    %c0_1 = arith.constant 0 : index
    %c0_2 = arith.constant 0 : index
    %1 = vector.load %arg2[%c0_1, %c0_2] : memref<16x1xi32, #tpu.memory_space<vmem>>, vector<16x1xi32>
    %cst = arith.constant dense<0xFF800000> : vector<16xf32>
    %2 = vector.multi_reduction <maximumf>, %0, %cst [1] : vector<16x8xf32> to vector<16xf32>
    %3 = vector.shape_cast %2 : vector<16xf32> to vector<16x1xf32>
    %4 = vector.broadcast %3 : vector<16x1xf32> to vector<16x8xf32>
    %5 = arith.subf %0, %4 : vector<16x8xf32>
    %6 = math.exp %5 : vector<16x8xf32>
    %cst_3 = arith.constant dense<0.000000e+00> : vector<16xf32>
    %7 = vector.multi_reduction <add>, %6, %cst_3 [1] : vector<16x8xf32> to vector<16xf32>
    %8 = vector.shape_cast %7 : vector<16xf32> to vector<16x1xf32>
    %9 = math.log %8 : vector<16x1xf32>
    %10 = tpu.iota {dimensions = array<i32: 1>} : vector<16x8xi32>
    %11 = vector.broadcast %1 : vector<16x1xi32> to vector<16x8xi32>
    %12 = arith.cmpi eq, %10, %11 : vector<16x8xi32>
    %cst_4 = arith.constant 0.000000e+00 : f32
    %13 = vector.broadcast %cst_4 : f32 to vector<16x8xf32>
    %14 = arith.select %12, %5, %13 : vector<16x8xi1>, vector<16x8xf32>
    %cst_5 = arith.constant dense<0.000000e+00> : vector<16xf32>
    %15 = vector.multi_reduction <add>, %14, %cst_5 [1] : vector<16x8xf32> to vector<16xf32>
    %16 = vector.shape_cast %15 : vector<16xf32> to vector<16x1xf32>
    %17 = arith.subf %9, %16 : vector<16x1xf32>
    %cst_6 = arith.constant 0.000000e+00 : f32
    %18 = vector.broadcast %cst_6 : f32 to vector<16x1xf32>
    %19 = arith.maximumf %17, %18 : vector<16x1xf32>
    %cst_7 = arith.constant 0.000000e+00 : f32
    %20 = vector.broadcast %cst_7 : f32 to vector<16x1xf32>
    %21 = arith.subf %20, %19 : vector<16x1xf32>
    %22 = math.exp %21 : vector<16x1xf32>
    %cst_8 = arith.constant 1.000000e+00 : f32
    %23 = vector.broadcast %cst_8 : f32 to vector<16x1xf32>
    %24 = arith.subf %23, %22 : vector<16x1xf32>
    %cst_9 = arith.constant 0.000000e+00 : f32
    %25 = vector.broadcast %cst_9 : f32 to vector<16x1xf32>
    %26 = arith.maximumf %24, %25 : vector<16x1xf32>
    %27 = arith.mulf %26, %26 : vector<16x1xf32>
    %28 = arith.mulf %27, %19 : vector<16x1xf32>
    %29 = tpu.iota {dimensions = array<i32: 0>} : vector<16x1xi32>
    %c16_i32 = arith.constant 16 : i32
    %30 = arith.muli %arg0, %c16_i32 : i32
    %31 = vector.broadcast %30 : i32 to vector<16x1xi32>
    %32 = arith.addi %29, %31 : vector<16x1xi32>
    %c40_i32 = arith.constant 40 : i32
    %33 = vector.broadcast %c40_i32 : i32 to vector<16x1xi32>
    %34 = arith.cmpi slt, %32, %33 : vector<16x1xi32>
    %cst_10 = arith.constant 0.000000e+00 : f32
    %35 = vector.broadcast %cst_10 : f32 to vector<16x1xf32>
    %36 = arith.select %34, %28, %35 : vector<16x1xi1>, vector<16x1xf32>
    %37 = vector.shape_cast %36 : vector<16x1xf32> to vector<1x16x1xf32>
    %cst_11 = arith.constant dense<0.000000e+00> : vector<1xf32>
    %38 = vector.multi_reduction <add>, %37, %cst_11 [1, 2] : vector<1x16x1xf32> to vector<1xf32>
    %39 = vector.shape_cast %38 : vector<1xf32> to vector<1x1x1xf32>
    %40 = vector.extract %39[0, 0, 0] : f32 from vector<1x1x1xf32>
    %41 = vector.broadcast %40 : f32 to vector<1x1xf32>
    %cst_12 = arith.constant 0.000000e+00 : f32
    %42 = vector.broadcast %cst_12 : f32 to vector<8x128xf32>
    %c0_13 = arith.constant 0 : index
    %c0_14 = arith.constant 0 : index
    %43 = vector.load %arg3[%c0_13, %c0_14] : memref<8x128xf32, #tpu.memory_space<vmem>>, vector<8x128xf32>
    tpu.vector_store %arg3[%c0_13, %c0_14], %42 {strides = array<i32>} : memref<8x128xf32, #tpu.memory_space<vmem>>, vector<8x128xf32>,
    %c0_15 = arith.constant 0 : index
    %c0_16 = arith.constant 0 : index
    %44 = vector.load %arg3[%c0_15, %c0_16] : memref<8x128xf32, #tpu.memory_space<vmem>>, vector<1x1xf32>
    tpu.vector_store %arg3[%c0_15, %c0_16], %41 {strides = array<i32>} : memref<8x128xf32, #tpu.memory_space<vmem>>, vector<1x1xf32>,
    return
  }
  func.func @transform_0(%arg0: i32) -> (i32, i32) {
    %c0_i32 = arith.constant 0 : i32
    %c0_i32_0 = arith.constant 0 : i32
    return %arg0, %c0_i32 : i32, i32
  }
  func.func @transform_1(%arg0: i32) -> (i32, i32) {
    %c0_i32 = arith.constant 0 : i32
    %c0_i32_0 = arith.constant 0 : i32
    return %arg0, %c0_i32 : i32, i32
  }
  func.func @transform_2(%arg0: i32) -> (i32, i32) {
    %c0_i32 = arith.constant 0 : i32
    %c0_i32_0 = arith.constant 0 : i32
    return %arg0, %c0_i32 : i32, i32
  }
}

</mosaic_0001>

<bundles_post_ra>
// kernel: tpu_custom_call.1
= control target key start
LH: loop header
LB: loop body
LE: loop exit
PB: predicated region body
PF: predicated region fallthrough
CT: control target
= control target key end

     0   :  { %7 = vsyncpa [#allocation3], 0  ;;  %s630_s0 = inlined_call_operand.vmem [shape: f32[40,8], index: 0, kind: input, shape index: {}]   ;;  %s631_s1 = inlined_call_operand.vmem [shape: s32[40,1], index: 1, kind: input, shape index: {}]   ;;  %s632_s2 = inlined_call_operand.hbm [shape: f32[24,128], index: 2, kind: output, shape index: {}]  }
   0x1   :  { %9 = vsyncpa [#allocation3 + $0x1], 0  ;;  %s536_s9 = smov 0   ;;  %s538_s10 = smov 0  }
   0x2   :  { %s540_s11 = smov 0   ;;  %s542_s12 = smov 0  }
   0x3 LB: > { %s557_s13 = sadd.s32 4294967295, %s517_s12   ;;  %s384_s14 = sadd.s32 4294967294, %s517_s12   ;;  %s517_s12 = sphi %s542_s12, %s638_s12   ;;  %s513_s11 = sphi %s540_s11, %s637_s11   ;;  %s509_s10 = sphi %s538_s10, %s636_s10   ;;  %s505_s9 = sphi %s536_s9, %s635_s9  }
   0x4   : > { %s561_s15 = sadd.s32 1, %s517_s12   ;;  %s74_s16 = sadd.s32 1, %s513_s11 }
   0x5   : > { %s71_s17 = ssub.s32 %s517_s12, %s561_s15  ;;  %p84_p0 = scmp.ne.s32.totalorder %s513_s11, %s509_s10 }
   0x6   : > { %p72_p1 = scmp.eq.s32.totalorder %s71_s17, 0  ;;  %p85_p2 = scmp.eq.s32.totalorder %s557_s13, 2 }
   0x7   : > { %p90_p3 = scmp.ne.s32.totalorder %s509_s10, %s505_s9  ;;  %p91_p4 = scmp.eq.s32.totalorder %s384_s14, 2 }
   0x8   : > { %s572_s18 = scalar_select %p72_p1, %s513_s11, %s74_s16  }
   0x9   : > { %p574_p5 = por %p85_p2, %p84_p0  ;;  %p578_p6 = por %p91_p4, %p90_p3 }
   0xa   : > { %p387_p7 = scmp.ge.s32.totalorder %s517_s12, 1  ;;  %p143_p8 = scmp.lt.s32.totalorder %s517_s12, 4 }
   0xc   : > { %p144_p9 = pnand %p387_p7, %p143_p8 }
   0xd   : > { %s389_s21 = sshll.u32 (!%p144_p9), %s557_s13, 1  ;;  %s393_s29 = sshll.u32 (!%p144_p9), %s557_s13, 4 }
   0xe   : > { %147 = sbr.rel (%p144_p9) target bundleno = 494 (0x1ee), region = 28  ;;  %p183_p10 = scmp.lt.s32.totalorder (!%p144_p9), %s389_s21, 4 }
   0xf   : > { %s175_s30 = sand.u32 (!%p144_p9), 1, %s509_s10   ;;  %s395_s5 = sshll.u32 (!%p144_p9), %s557_s13, 3 }
  0x10   : > { %s388_s3 = sshll.u32 (!%p144_p9), %s175_s30, 3  ;;  %s308_s8 = scalar_lea.hbm (!%p144_p9), %s632_s2, %s395_s5 }
  0x11   : > { %s177_s4 = scalar_lea.vmem (!%p144_p9), [#allocation2], %s388_s3  ;;  %s312_s16 = sshll.u32 (!%p144_p9), %s308_s8, 4  ;;  %s313_s16 = int_to_ptr.hbm [resolvable:$true] %s312_s16 }
  0x12   : > { %s310_s14 = sshll.u32 (!%p144_p9), %s177_s4, 4  ;;  %s311_s14 = int_to_ptr.vmem [resolvable:$true] %s310_s14 }
  0x13   : > { %v519_v0 = vmov 0   ;;  %s640_s21 = smov (!%p183_p10, %s389_s21), 4  ;;  %vm210_vm0 = vcmask 64512   ;;  %v233_v7 = vlaneseq  ;;  %v273_v45 = vstv %s393_s29 }
  0x14   : > { %441 = vset.pattern.permute.xlu1 %v519_v0  ;;  %442 = vset.pattern.permute.xlu0 %v519_v0  ;;  %s390_s22 = sshll.u32 %s640_s21, 3  ;;  %vm280_vm5 = vcmask 7168   ;;  %vm295_vm6 = vcmask 0   ;;  %s298_s21 = scalar_lea.sflag [#allocation3], %s175_s30 }
  0x15   : > { %s186_s25 = scalar_lea.vmem %s630_s0, %s390_s22  ;;  %s200_s28 = scalar_lea.vmem %s631_s1, %s390_s22  ;;  %v234_v8 = vand.u32 127, %v233_v7  ;;  %v270_v44 = vshrl.u32 %v233_v7, 7 }
  0x16   : > { %v206_v1 = vld [vmem:[%s186_s25] sm:$0xff]  ;;  %v207_v4 = vld [vmem:[%s186_s25 + $0x8] sm:$0xff]  ;;  %s469_s22 = sshra.s32 %s313_s16, 4  ;;  %s475_s25 = scalar_lea.hbm %s632_s2, 24  ;;  %s470_s22 = int_to_ptr.hbm [resolvable:$true] %s469_s22 }
  0x17   : > { %v208_v2 = vld [vmem:[%s200_s28] sm:$0xff]  ;;  %v211_v3 = vsel %vm210_vm0, %v206_v1, -inf  ;;  %v209_v5 = vld [vmem:[%s200_s28 + $0x8] sm:$0xff]  ;;  %v214_v6 = vsel %vm210_vm0, %v207_v4, -inf  ;;  %v271_v46 = vadd.s32 8, %v270_v44  ;;  %v274_v49 = vadd.s32 %v273_v45, %v270_v44  ;;  %s471_s23 = scalar_lea.hbm %s470_s22, 8  ;;  %p476_p0 = scmp.lt.s32.totalorder %s470_s22, %s632_s2 }
  0x18   : > { %236 = vperm.xlu1 %441, %v208_v2   ;;  %212 = vmax.xlane.f32.xlu0 %v211_v3  ;;  %p472_p11 = scmp.ne.s32.totalorder %s470_s22, %s471_s23  ;;  %p477_p1 = scmp.lt.s32.totalorder %s475_s25, %s471_s23 }
  0x19   : > { %v275_v51 = vadd.s32 %v273_v45, %v271_v46  ;;  %vm276_vm3 = vcmp.lt.s32.totalorder %v274_v49, 40 }
  0x1a   : > { %p473_p12 = pnand %p472_p11, %p574_p5  ;;  %p478_p2 = por %p477_p1, %p476_p0 }
  0x1b   : > { %vm277_vm4 = vcmp.lt.s32.totalorder %v275_v51, 40 }
  0x1c   : > { %p474_p13 = pneg %p473_p12 }
  0x1e   : > { %p479_p3 = pnand %p478_p2, %p474_p13 }
  0x20   : > { %239 = vperm.xlu1 %441, %v209_v5   ;;  %215 = vmax.xlane.f32.xlu0 %v214_v6 }
  0x8a   : > { %v237_v9 = vpop.permute.xlu1 %236 }
  0x8b   : > { %v213_v10 = vpop.xlane.xlu0 %212  ;;  %vm241_vm1 = vcmp.eq.s32.totalorder %v234_v8, %v237_v9 }
  0x8c   : > { %v217_v11 = vsub.f32 %v206_v1, %v213_v10 }
  0x8e   : > { %v219_v12 = vmul.f32 1.442695, %v217_v11  ;;  %v243_v13 = vsel %vm241_vm1, %v217_v11, 0.0 }
  0x8f   : > { %v245_v14 = vsel %vm210_vm0, %v243_v13, 0.0 }
  0x90   : > { %443 = vpow2.f32 %v219_v12  ;;  %246 = vadd.xlane.f32.xlu0 %v245_v14 }
  0x92   : > { %v240_v15 = vpop.permute.xlu1 %239 }
  0x93   : > { %v216_v16 = vpop.xlane.xlu0 %215  ;;  %vm242_vm2 = vcmp.eq.s32.totalorder %v234_v8, %v240_v15 }
  0x94   : > { %v218_v17 = vsub.f32 %v207_v4, %v216_v16  ;;  %v520_v4 = vmov 0.0  }
  0x95   : > { %294 = vst [vmem:[%s177_s4] sm:$0xff] %v520_v4 }
  0x96   : > { %v444_v18 = vpop.eup %443  ;;  %v221_v19 = vmul.f32 1.442695, %v218_v17  ;;  %v244_v20 = vsel %vm242_vm2, %v218_v17, 0.0 }
  0x97   : > { %v223_v21 = vsel %vm210_vm0, %v444_v18, 0.0  ;;  %v248_v22 = vsel %vm210_vm0, %v244_v20, 0.0 }
  0x98   : > { %445 = vpow2.f32 %v221_v19  ;;  %224 = vadd.xlane.f32.xlu2 %v223_v21  ;;  %249 = vadd.xlane.f32.xlu1 %v248_v22 }
  0x9e   : > { %v446_v23 = vpop.eup %445 }
  0x9f   : > { %v226_v24 = vsel %vm210_vm0, %v446_v23, 0.0 }
  0xa0   : > { %227 = vadd.xlane.f32.xlu2 %v226_v24 }
 0x103   : > { %v247_v29 = vpop.xlane.xlu0 %246 }
 0x10b   : > { %v225_v25 = vpop.xlane.xlu2 %224  ;;  %v250_v36 = vpop.xlane.xlu1 %249 }
 0x10c   : > { %447 = vlog2.f32 %v225_v25 }
 0x112   : > { %v448_v26 = vpop.eup %447 }
 0x113   : > { %v230_v27 = vmul.f32 0.6931472, %v448_v26  ;;  %v228_v28 = vpop.xlane.xlu2 %227 }
 0x114   : > { %449 = vlog2.f32 %v228_v28 }
 0x115   : > { %v251_v30 = vsub.f32 %v230_v27, %v247_v29 }
 0x117   : > { %v253_v31 = vmax.f32 %v251_v30, 0.0 }
 0x119   : > { %v255_v32 = vsub.f32 0.0, %v253_v31 }
 0x11a   : > { %v450_v33 = vpop.eup %449 }
 0x11b   : > { %v257_v34 = vmul.f32 1.442695, %v255_v32  ;;  %v232_v35 = vmul.f32 0.6931472, %v450_v33 }
 0x11d   : > { %451 = vpow2.f32 %v257_v34  ;;  %v252_v37 = vsub.f32 %v232_v35, %v250_v36 }
 0x11f   : > { %v254_v38 = vmax.f32 %v252_v37, 0.0 }
 0x121   : > { %v256_v39 = vsub.f32 0.0, %v254_v38 }
 0x123   : > { %v452_v40 = vpop.eup %451  ;;  %v259_v41 = vmul.f32 1.442695, %v256_v39 }
 0x124   : > { %v261_v42 = vsub.f32 1.0, %v452_v40 }
 0x125   : > { %453 = vpow2.f32 %v259_v41 }
 0x126   : > { %v263_v43 = vmax.f32 %v261_v42, 0.0 }
 0x128   : > { %v265_v47 = vmul.f32 %v263_v43, %v263_v43 }
 0x12a   : > { %v267_v53 = vmul.f32 %v265_v47, %v253_v31 }
 0x12b   : > { %v454_v48 = vpop.eup %453 }
 0x12c   : > { %v262_v50 = vsub.f32 1.0, %v454_v48  ;;  %v278_v56 = vsel %vm276_vm3, %v267_v53, 0.0 }
 0x12d   : > { %v281_v58 = vsel %vm280_vm5, %v278_v56, 0.0 }
 0x12e   : > { %v264_v52 = vmax.f32 %v262_v50, 0.0 }
 0x130   : > { %v266_v54 = vmul.f32 %v264_v52, %v264_v52 }
 0x132   : > { %v268_v55 = vmul.f32 %v266_v54, %v254_v38 }
 0x134   : > { %v279_v57 = vsel %vm277_vm4, %v268_v55, 0.0 }
 0x135   : > { %v282_v59 = vsel %vm280_vm5, %v279_v57, 0.0 }
 0x136   : > { %v283_v60 = vadd.f32 %v282_v59, %v281_v58 }
 0x138   : > { %284 = vadd.xlane.f32.xlu2 %v283_v60 }
 0x1ab   : > { %v285_v61 = vpop.xlane.xlu2 %284 }
 0x1ac   : > { %v286_v62 = vrot.slane %v285_v61, 4 }
 0x1ae   : > { %v287_v63 = vadd.f32 %v286_v62, %v285_v61 }
 0x1b0   : > { %v288_v0 = vrot.slane %v287_v63, 2 }
 0x1b2   : > { %v289_v1 = vadd.f32 %v288_v0, %v287_v63 }
 0x1b4   : > { %v290_v2 = vrot.slane %v289_v1, 1 }
 0x1b6   : > { %v291_v3 = vadd.f32 %v290_v2, %v289_v1 }
 0x1b8   : > { %398 = vpush %v291_v3 }
 0x1e9   : > { %s399_s17 = spop %398 }
 0x1ea   : > { %v293_v5 = vstv %s399_s17 }
 0x1eb   : > { %296 = vst.msk [vmem:[%s177_s4] sm:$0x1] %vm295_vm6, %v293_v5 }
 0x1ec   : > { %482 = shalt.err (!%p479_p3)
}
 0x1ed   : > { %400 = dma.vmem_to_hbm [thread:$0]  (%p574_p5), %s311_s14, 128, %s313_s16, %s298_s21  }
 0x1ee PF: > { %p406_p4 = scmp.ge.s32.totalorder %s517_s12, 2  ;;  %s324_s28 = sand.u32 1, %s505_s9  }
 0x1ef   : > { %s325_s29 = scalar_lea.sflag [#allocation3], %s324_s28 }
 0x1f0   : > { %p403_p7 = pnand %p406_p4, %p578_p6 }
 0x1f2   : > { %p404_p8 = pneg %p403_p7 }
 0x1f4   : > { %500 = dma.done.wait (%p404_p8), %s325_s29, 128  }
 0x1f5   : > { %502 = vsyncadd (%p404_p8), %s325_s29, 4294967168  ;;  %p12_p9 = scmp.ge.s32.totalorder %s561_s15, 5   ;;  %s635_s9 = smov %s509_s10 }
 0x1f6   : > { %s636_s10 = smov %s513_s11  ;;  %s637_s11 = smov %s572_s18 }
 0x1f7   : > { %s638_s12 = smov %s561_s15  ;;  %14 = sbr.rel (!%p12_p9) target bundleno = 3 (0x3), region = 66 }
 0x1fc   :  { %331 = vsyncpa [#allocation3], 1 }
 0x1fd   :  { %333 = vsyncpa [#allocation3 + $0x1], 1 }

</bundles_post_ra>
